<compile_context>
chip_gen: v6e
topology: v6e:2x2x1
jax: 0.10.0
libtpu: 0.0.40
codegen_flags: <defaults>
</compile_context>

<pallas_src>
import functools

import jax
import jax.numpy as jnp
from jax import lax
from jax.experimental import pallas as pl
from jax.experimental.pallas import tpu as pltpu


# ~8 MiB per weight tile -> ~16 MiB double-buffered (24 MiB triple-buffered),
# comfortably inside every generation's VMEM once vmem_limit_bytes is raised.
_WEIGHT_TILE_BYTES = 8 << 20


def _pooler_kernel_full_k(x_ref, w_ref, b_ref, o_ref):
    """Collapsed-K path: grid = (H_out // tn,), whole contraction per step."""
    # x_ref: [B, H_in]   (resident across the whole grid)
    # w_ref: [tn, H_in]  nn.Linear weight tile ([out, in] layout, NOT transposed)
    # b_ref: [1, tn]
    # o_ref: [B, tn]
    y = lax.dot_general(
        x_ref[...], w_ref[...],
        dimension_numbers=(((1,), (1,)), ((), ())),
        preferred_element_type=jnp.float32,
    )
    y = y + b_ref[...].astype(jnp.float32)
    o_ref[...] = jnp.tanh(y).astype(o_ref.dtype)


def _pooler_kernel_tiled_k(x_ref, w_ref, b_ref, o_ref, acc_ref, *, tk):
    """Fallback path for very large H_in: (j, k) grid, reduction axis last."""
    # x_ref:   [B, H_in]  fully resident; sliced in-kernel along K
    # w_ref:   [tn, tk]
    # b_ref:   [1, tn]
    # o_ref:   [B, tn]
    # acc_ref: [B, tn]    persistent f32 accumulator
    k = pl.program_id(1)

    @pl.when(k == 0)
    def _():
        acc_ref[...] = jnp.zeros_like(acc_ref)

    start = k * tk
    if tk % 128 == 0:
        start = pl.multiple_of(start, 128)
    x_blk = x_ref[:, pl.ds(start, tk)]

    acc_ref[...] += lax.dot_general(
        x_blk, w_ref[...],
        dimension_numbers=(((1,), (1,)), ((), ())),
        preferred_element_type=jnp.float32,
    )

    # Store-at-last is valid because k is the innermost grid axis.
    @pl.when(k == pl.num_programs(1) - 1)
    def _():
        y = acc_ref[...] + b_ref[...].astype(jnp.float32)
        o_ref[...] = jnp.tanh(y).astype(o_ref.dtype)


def _aligned_tile(dim, max_elems):
    """Largest t <= max_elems with dim % t == 0 and t a 128-multiple.

    Prefers 256-multiples (v6e/v7x MXU width; also 128-aligned for v5e).
    Unaligned / small dims fall back to the full dimension, which satisfies
    the (8, 128) BlockSpec rule via the full-extent exception.
    """
    for align in (256, 128):
        if dim % align:
            continue
        t = (min(max_elems, dim) // align) * align
        while t >= align and dim % t:
            t -= align
        if t >= align:
            return t
    return dim


def linear_pooler(hidden_states, weight, bias):
    """hidden_states: [B, S, H], weight: [H_out, H_in], bias: [H_out] -> [B, H_out]."""
    B, S, H = hidden_states.shape
    H_out, H_in = weight.shape
    assert H_in == H

    # Glue: token-0 gather (a single [B, H] strided slice, B*H bytes).
    first_token = hidden_states[:, 0, :]
    bias2d = bias.reshape(1, H_out)

    x_itemsize = jnp.dtype(first_token.dtype).itemsize
    w_itemsize = jnp.dtype(weight.dtype).itemsize
    b_itemsize = jnp.dtype(bias.dtype).itemsize
    out_dtype = hidden_states.dtype
    out_itemsize = jnp.dtype(out_dtype).itemsize

    # Output-column tile sized against the weight-tile byte budget with the
    # full contraction kept per step (collapsed K).
    max_tn = max(_WEIGHT_TILE_BYTES // max(H_in * w_itemsize, 1), 1)
    tn = _aligned_tile(H_out, max_tn)
    collapse_k = tn * H_in * w_itemsize <= _WEIGHT_TILE_BYTES

    if collapse_k:
        grid = (H_out // tn,)
        kernel = _pooler_kernel_full_k
        in_specs = [
            pl.BlockSpec((B, H_in), lambda j: (0, 0)),    # x: fully resident
            pl.BlockSpec((tn, H_in), lambda j: (j, 0)),   # W ([out, in])
            pl.BlockSpec((1, tn), lambda j: (0, j)),      # bias
        ]
        out_specs = pl.BlockSpec((B, tn), lambda j: (0, j))
        scratch_shapes = []
        dim_semantics = ("parallel",)
        w_tile_bytes = tn * H_in * w_itemsize
        n_w_bufs = 2
        acc_bytes = 0
    else:
        # Very large H_in: keep 8 MiB weight tiles, reduction axis last,
        # triple-buffered weight stream to hide the j-boundary bubble.
        tn = _aligned_tile(H_out, 512)
        tk = _aligned_tile(H_in, max(_WEIGHT_TILE_BYTES // max(tn * w_itemsize, 1), 1))
        grid = (H_out // tn, H_in // tk)
        kernel = functools.partial(_pooler_kernel_tiled_k, tk=tk)
        in_specs = [
            pl.BlockSpec((B, H_in), lambda j, k: (0, 0)),  # x: fully resident
            pl.BlockSpec((tn, tk), lambda j, k: (j, k),
                         pipeline_mode=pl.Buffered(3)),    # weight stream
            pl.BlockSpec((1, tn), lambda j, k: (0, j)),    # bias
        ]
        out_specs = pl.BlockSpec((B, tn), lambda j, k: (0, j))
        scratch_shapes = [pltpu.VMEM((B, tn), jnp.float32)]
        dim_semantics = ("parallel", "arbitrary")
        w_tile_bytes = tn * tk * w_itemsize
        n_w_bufs = 3
        acc_bytes = B * tn * 4

    # Explicit VMEM budget (per perf review): actual footprint + headroom,
    # never below 16 MiB and never above 48 MiB (v7x physical is 64 MiB/TC).
    needed = (
        2 * B * H_in * x_itemsize          # x buffers
        + n_w_bufs * w_tile_bytes          # weight buffers
        + 2 * tn * b_itemsize              # bias buffers
        + 2 * B * tn * out_itemsize        # output buffers
        + acc_bytes                        # accumulator scratch (tiled-K only)
    )
    vmem_limit = int(min(max(needed + needed // 4 + (2 << 20), 16 << 20), 48 << 20))

    return pl.pallas_call(
        kernel,
        out_shape=jax.ShapeDtypeStruct((B, H_out), out_dtype),
        grid_spec=pltpu.PrefetchScalarGridSpec(
            num_scalar_prefetch=0,
            grid=grid,
            in_specs=in_specs,
            out_specs=out_specs,
            scratch_shapes=scratch_shapes,
        ),
        compiler_params=pltpu.CompilerParams(
            # j (output columns) is shardable across TensorCores; on a v7x
            # deployment with H_out/tn >= 2, switch to pltpu.CORE_PARALLEL to
            # force the weight stream onto both TCs' DMA paths.
            dimension_semantics=dim_semantics,
            vmem_limit_bytes=vmem_limit,
        ),
    )(first_token, weight, bias2d)


def _reference(hidden_states, weight, bias):
    x = hidden_states[:, 0, :]
    return jnp.tanh(x @ weight.T + bias)


if __name__ == "__main__":
    key = jax.random.PRNGKey(0)
    k_x, k_w, k_b = jax.random.split(key, 3)

    B, S, H = 2, 8, 32
    hidden_states = jax.random.normal(k_x, (B, S, H), dtype=jnp.float32)

    # Deterministic synthetic parameters (shapes from nn.Linear(H, H)).
    weight = jax.random.normal(k_w, (H, H), dtype=jnp.float32) * 0.02
    bias = jax.random.normal(k_b, (H,), dtype=jnp.float32) * 0.02

    out = linear_pooler(hidden_states, weight, bias)
    out = jax.block_until_ready(out)

    ref = _reference(hidden_states, weight, bias)
    assert out.shape == (B, H)
    assert jnp.allclose(out, ref, atol=1e-5, rtol=1e-5)

    print("KERNEL_OK")
</pallas_src>

<mosaic_0001>
module attributes {stable_mosaic.version = 11 : i64} {
  func.func @_pooler_kernel_full_k(%arg0: i32, %arg1: memref<2x32xf32, #tpu.memory_space<vmem>>, %arg2: memref<32x32xf32, #tpu.memory_space<vmem>>, %arg3: memref<1x32xf32, #tpu.memory_space<vmem>>, %arg4: memref<2x32xf32, #tpu.memory_space<vmem>>) attributes {dimension_semantics = [#tpu.dimension_semantics<parallel>], iteration_bounds = array<i64: 1>, scalar_prefetch = 0 : i64, scratch_operands = 0 : i64, tpu.core_type = #tpu.core_type<tc>, window_params = [{pipeline_mode = #tpu.pipeline_mode<synchronous>, transform_indices = @transform_0, window_bounds = array<i64: 2, 32>}, {transform_indices = @transform_1, window_bounds = array<i64: 32, 32>}, {transform_indices = @transform_2, window_bounds = array<i64: 1, 32>}, {transform_indices = @transform_3, window_bounds = array<i64: 2, 32>}]} {
    %c0 = arith.constant 0 : index
    %c0_0 = arith.constant 0 : index
    %0 = vector.load %arg1[%c0, %c0_0] : memref<2x32xf32, #tpu.memory_space<vmem>>, vector<2x32xf32>
    %c0_1 = arith.constant 0 : index
    %c0_2 = arith.constant 0 : index
    %1 = vector.load %arg2[%c0_1, %c0_2] : memref<32x32xf32, #tpu.memory_space<vmem>>, vector<32x32xf32>
    %cst = arith.constant dense<0.000000e+00> : vector<2x32xf32>
    %2 = tpu.matmul %0, %1, %cst {dimension_numbers = #tpu.dot_dimension_numbers<[1], [1], [0], [0], [0, 0, 1, 0], [], []>} : vector<2x32xf32>, vector<32x32xf32>, vector<2x32xf32> -> vector<2x32xf32>
    %c0_3 = arith.constant 0 : index
    %c0_4 = arith.constant 0 : index
    %3 = vector.load %arg3[%c0_3, %c0_4] : memref<1x32xf32, #tpu.memory_space<vmem>>, vector<1x32xf32>
    %4 = vector.broadcast %3 : vector<1x32xf32> to vector<2x32xf32>
    %5 = arith.addf %2, %4 : vector<2x32xf32>
    %6 = math.tanh %5 : vector<2x32xf32>
    %c0_5 = arith.constant 0 : index
    %c0_6 = arith.constant 0 : index
    %7 = vector.load %arg4[%c0_5, %c0_6] : memref<2x32xf32, #tpu.memory_space<vmem>>, vector<2x32xf32>
    tpu.vector_store %arg4[%c0_5, %c0_6], %6 {strides = array<i32>} : memref<2x32xf32, #tpu.memory_space<vmem>>, vector<2x32xf32>,
    return
  }
  func.func @transform_0(%arg0: i32) -> (i32, i32) {
    %c0_i32 = arith.constant 0 : i32
    %c0_i32_0 = arith.constant 0 : i32
    %c0_i32_1 = arith.constant 0 : i32
    return %c0_i32, %c0_i32_0 : i32, i32
  }
  func.func @transform_1(%arg0: i32) -> (i32, i32) {
    %c0_i32 = arith.constant 0 : i32
    %c0_i32_0 = arith.constant 0 : i32
    return %arg0, %c0_i32 : i32, i32
  }
  func.func @transform_2(%arg0: i32) -> (i32, i32) {
    %c0_i32 = arith.constant 0 : i32
    %c0_i32_0 = arith.constant 0 : i32
    return %c0_i32, %arg0 : i32, i32
  }
  func.func @transform_3(%arg0: i32) -> (i32, i32) {
    %c0_i32 = arith.constant 0 : i32
    %c0_i32_0 = arith.constant 0 : i32
    return %c0_i32, %arg0 : i32, i32
  }
}

</mosaic_0001>

<bundles_post_ra>
// kernel: tpu_custom_call.1
= control target key start
LH: loop header
LB: loop body
LE: loop exit
PB: predicated region body
PF: predicated region fallthrough
CT: control target
= control target key end

     0   :  { %8 = vsyncpa [#allocation3], 0  ;;  %s294_s0 = inlined_call_operand.hbm [shape: f32[2,32], index: 0, kind: input, shape index: {}]   ;;  %s295_s1 = inlined_call_operand.hbm [shape: f32[32,32], index: 1, kind: input, shape index: {}]   ;;  %s296_s2 = inlined_call_operand.vmem [shape: f32[1,32], index: 2, kind: input, shape index: {}]   ;;  %s297_s3 = inlined_call_operand.hbm [shape: f32[2,32], index: 3, kind: output, shape index: {}]  }
   0x1   :  { %9 = vsyncpa [#allocation6], 0 }
   0x2   :  { %10 = vsyncpa [#allocation4], 0  ;;  %s255_s12 = smov [#allocation2]   ;;  %s256_s14 = smov [#allocation5]  }
   0x3   :  { %s17_s13 = sshll.u32 %s255_s12, 4  ;;  %s26_s15 = sshll.u32 %s256_s14, 4  ;;  %s18_s13 = int_to_ptr.vmem [resolvable:$true] %s17_s13  ;;  %s27_s15 = int_to_ptr.vmem [resolvable:$true] %s26_s15 }
   0x4   :  { %s197_s16 = scalar_lea.vmem %s18_s13, 32  ;;  %p202_p1 = scmp.lt.s32.totalorder %s18_s13, %s18_s13 }
   0x5   :  { %p198_p0 = scmp.ne.s32.totalorder %s18_s13, %s197_s16  ;;  %p203_p2 = scmp.lt.s32.totalorder %s197_s16, %s197_s16 }
   0x7   :  { %p204_p3 = por %p203_p2, %p202_p1 }
   0x9   :  { %p205_p4 = pnand %p204_p3, %p198_p0 }
   0xb   :  { %208 = shalt.err (!%p205_p4)
}
   0xc   :  { %20 = dma.hbm_to_vmem [thread:$0]  %s294_s0, 32, %s18_s13, [#allocation3]  }
   0xd   :  { %s217_s19 = scalar_lea.vmem %s27_s15, 512  ;;  %p222_p6 = scmp.lt.s32.totalorder %s27_s15, %s27_s15 }
   0xe   :  { %p218_p5 = scmp.ne.s32.totalorder %s27_s15, %s217_s19  ;;  %p223_p7 = scmp.lt.s32.totalorder %s217_s19, %s217_s19 }
  0x10   :  { %p224_p8 = por %p223_p7, %p222_p6 }
  0x12   :  { %p225_p9 = pnand %p224_p8, %p218_p5 }
  0x14   :  { %228 = shalt.err (!%p225_p9)
}
  0x15   :  { %s257_s20 = smov 128   ;;  %s258_s21 = smov 8  }
  0x16   :  { %32 = dma.hbm_to_vmem [thread:$0]  %s295_s1, 512, %s27_s15, [#allocation6], %s257_s20, %s257_s20, %s258_s21  }
  0x17   :  { %249 = dma.done.wait [#allocation3], 32  }
  0x18   :  { %250 = vsyncadd [#allocation3], 4294967264 }
  0x19   :  { %251 = dma.done.wait [#allocation6], 512  }
  0x1a   :  { %252 = vsyncadd [#allocation6], 4294966784  ;;  %v259_v0 = vmov 0.0   ;;  %vm260_vm0 = vmmov 0   ;;  %vm53_vm1 = vcmask 261120   ;;  %v45_v1 = vld [vmem:[#allocation5 + $0x18] sm:$0xff] }
  0x1b   :  { %169 = vmatprep.subr.mxu0 %v259_v0  ;;  %177 = vmatprep.mubr.msk.f32.mxu0 %vm260_vm0, %v259_v0  ;;  %v44_v2 = vld [vmem:[#allocation5 + $0x10] sm:$0xff]  ;;  %v43_v3 = vld [vmem:[#allocation5 + $0x8] sm:$0xff]  ;;  %v42_v4 = vld [vmem:[#allocation5] sm:$0xff]  ;;  %s261_s24 = smov [#allocation7]   ;;  %vm140_vm2 = vcmask 254976  }
  0x1c   :  { %170 = vmatpush3.xpose.msk.msra.mxu0 %vm53_vm1, %v45_v1  ;;  %v41_v5 = vld [vmem:[#allocation2] sm:$0x3]  ;;  %s148_s25 = sshll.u32 %s261_s24, 4  ;;  %s149_s25 = int_to_ptr.vmem [resolvable:$true] %s148_s25 }
  0x1d   :  { %171 = vmatprep.subr.mxu0 %v259_v0  ;;  %v158_v6 = vld [vmem:[%s296_s2] ss:$0 sm:$0xff]  ;;  %s229_s26 = scalar_lea.vmem %s149_s25, 32  ;;  %p234_p11 = scmp.lt.s32.totalorder %s149_s25, %s149_s25 }
  0x1e   :  { %p230_p10 = scmp.ne.s32.totalorder %s149_s25, %s229_s26  ;;  %p235_p12 = scmp.lt.s32.totalorder %s229_s26, %s229_s26 }
  0x20   :  { %172 = vmatpush3.xpose.msk.msra.mxu0 %vm53_vm1, %v44_v2  ;;  %p236_p13 = por %p235_p12, %p234_p11 }
  0x21   :  { %173 = vmatprep.subr.mxu0 %v259_v0 }
  0x22   :  { %p237_p0 = pnand %p236_p13, %p230_p10 }
  0x24   :  { %174 = vmatpush3.xpose.msk.msra.mxu0 %vm53_vm1, %v43_v3 }
  0x25   :  { %175 = vmatprep.subr.mxu0 %v259_v0 }
  0x28   :  { %176 = vmatpush3.xpose.msk.msra.mxu0 %vm53_vm1, %v42_v4 }
  0x2b   :  { %178 = vmatmul.mubr.msk.f32.vlgmr.msra.gmra.mxu0 %vm53_vm1, %v41_v5 }
  0xeb   :  { %v135_v7 = vpop.f32.mrf.mxu0 }
  0xec   :  { %v136_v8 = vadd.f32 %v158_v6, %v135_v7 }
  0xed   :  { %v179_v9 = vpop.f32.mrf.mxu0 }
  0xee   :  { %187 = vtanh.f32 %v136_v8 }
  0xfb   :  { %v188_v10 = vpop.eup %187 }
  0xfc   :  { %141 = vst.msk [vmem:[#allocation7] sm:$0x3] %vm140_vm2, %v188_v10 }
  0xfd   :  { %240 = shalt.err (!%p237_p0)
}
  0xfe   :  { %151 = dma.vmem_to_hbm [thread:$0]  %s149_s25, 32, %s297_s3, [#allocation4]  }
  0xff   :  { %253 = dma.done.wait [#allocation4], 32  }
 0x100   :  { %254 = vsyncadd [#allocation4], 4294967264 }
 0x101   :  { %155 = vsyncpa [#allocation3], 1 }
 0x102   :  { %156 = vsyncpa [#allocation6], 1 }
 0x103   :  { %157 = vsyncpa [#allocation4], 1 }

</bundles_post_ra>
